<compile_context>
chip_gen: v7x
topology: tpu7x:2x2x1
jax: 0.10.0
libtpu: 0.0.40
codegen_flags: <defaults>
</compile_context>

<pallas_src>
import math
from functools import partial

import jax
import jax.numpy as jnp
from jax import lax
from jax.experimental import pallas as pl
from jax.experimental.pallas import tpu as pltpu


def prepare_weight(weight):
    """Pack the torch-layout conv weight once, outside the hot path.

    weight: [O, C, K=3] (torch Conv1d layout) ->
    returns: [3*O, C] bf16, where row k*O + o holds weight[o, :, k].
    """
    O, C, K = weight.shape
    w = jnp.transpose(weight, (2, 0, 1)).reshape(K * O, C)   # (K*O, C)
    return w.astype(jnp.bfloat16)


def token_conv_kernel(x_ref, w_ref, o_ref):
    # x_ref: (L, C) input for one batch element (channels-last, ideally bf16)
    # w_ref: (3*O, C) bf16 packed taps
    # o_ref: (O, L) output in NCW layout (L on the 128-lane axis -> dense vst)
    O, L = o_ref.shape

    # No-op when the producer already emits bf16; otherwise a cheap VPU cast.
    x = x_ref[...].astype(jnp.bfloat16)

    # One fused matmul for all three taps (NT contraction, like q @ k^T):
    #   q[k*O + o, t] = sum_c weight[o, c, k] * x[t, c]
    q = lax.dot_general(
        w_ref[...], x,
        dimension_numbers=(((1,), (1,)), ((), ())),
        preferred_element_type=jnp.float32,
    )  # (3*O, L), f32 accumulation

    # Circular conv, PyTorch circular padding=1, kernel=3:
    #   y[o, t] = sum_k q[k*O + o, (t + k - 1) mod L]
    # Shift the small (O, L) products along the lane axis (XLU vrot), not x.
    y = (pltpu.roll(q[:O, :], shift=1, axis=1)           # tap k=0 uses x[t-1]
         + q[O:2 * O, :]                                  # tap k=1 uses x[t]
         + pltpu.roll(q[2 * O:, :], shift=L - 1, axis=1))  # k=2 uses x[t+1]

    o_ref[...] = y.astype(o_ref.dtype)                   # lane-dense store


@partial(jax.jit, static_argnames=("out_dtype", "return_ncw"))
def token_de_embedding(x, w_kernel, *, out_dtype=jnp.bfloat16, return_ncw=False):
    """x: [B, L, d_model] (bf16 preferred); w_kernel: [3*input_size, d_model]
    from prepare_weight.

    Returns [B, L, input_size] (NLC, matching TokendeEmbedding.forward) by
    default, or the kernel-native NCW [B, input_size, L] if return_ncw=True.
    """
    B, L, C = x.shape
    O3, C2 = w_kernel.shape
    assert C2 == C and O3 % 3 == 0
    O = O3 // 3

    flops = 2 * B * L * C * O3
    bytes_accessed = (x.size * x.dtype.itemsize
                      + w_kernel.size * w_kernel.dtype.itemsize
                      + B * L * O * jnp.dtype(out_dtype).itemsize)

    # Per-step VMEM estimate with lane padding (C=32 pads to 128 lanes).
    est = (2 * L * 128 * 2            # x double buffer, bf16, C lane-padded
           + 2 * O * max(L, 128) * 2  # out double buffer, bf16
           + 2 * O3 * 128 * 2         # resident packed weights
           + O3 * max(L, 128) * 4     # q + roll temps, f32
           + (4 << 20))               # headroom for Mosaic internals
    vmem_limit = min(max(est, 32 << 20), 48 << 20)   # <= 48 MiB: safe on v7x

    y_ncw = pl.pallas_call(
        token_conv_kernel,
        out_shape=jax.ShapeDtypeStruct((B, O, L), out_dtype),
        grid_spec=pltpu.PrefetchScalarGridSpec(
            num_scalar_prefetch=0,
            grid=(B,),                                         # one batch / step
            in_specs=[
                pl.BlockSpec((None, L, C), lambda b: (b, 0, 0)),
                pl.BlockSpec((O3, C), lambda b: (0, 0)),       # weights resident
            ],
            out_specs=pl.BlockSpec((None, O, L), lambda b: (b, 0, 0)),
        ),
        compiler_params=pltpu.CompilerParams(
            dimension_semantics=("parallel",),      # megacore shards over batch
            vmem_limit_bytes=vmem_limit,
        ),
        cost_estimate=pl.CostEstimate(
            flops=flops, transcendentals=0, bytes_accessed=bytes_accessed),
    )(x, w_kernel)

    if return_ncw:
        return y_ncw                               # zero extra HBM traffic

    # Module-facing NLC view: a bf16 transpose (half the bytes of the old f32
    # one).  Consumers that can eat NCW should use return_ncw=True instead.
    return jnp.transpose(y_ncw, (0, 2, 1))


def _reference(x, weight):
    """Plain-JAX reference: explicit circular pad + conv (NCW like torch)."""
    x_ncw = jnp.transpose(x, (0, 2, 1))                       # [B, C, L]
    x_pad = jnp.pad(x_ncw, ((0, 0), (0, 0), (1, 1)), mode="wrap")
    B, C, Lp = x_pad.shape
    L = Lp - 2
    taps = jnp.stack([x_pad[:, :, k:k + L] for k in range(3)], axis=-1)  # [B,C,L,3]
    y = jnp.einsum("bclk,ock->bol", taps, weight)
    return jnp.transpose(y, (0, 2, 1))                        # [B, L, O]


if __name__ == "__main__":
    d_model = 32      # Conv1d in_channels
    input_size = 16   # Conv1d out_channels
    B, L = 2, 128     # small batch; L = one full lane tile

    key = jax.random.PRNGKey(0)
    kx, kw = jax.random.split(key)

    # Simulate an upstream producer that already emits bf16 activations.
    x = jax.random.normal(kx, (B, L, d_model), dtype=jnp.float32)
    x = x.astype(jnp.bfloat16)

    # kaiming_normal_(mode='fan_in', nonlinearity='leaky_relu'), torch layout [O, C, 3]
    fan_in = d_model * 3
    gain = math.sqrt(2.0 / (1.0 + 0.01 ** 2))
    std = gain / math.sqrt(fan_in)
    weight = std * jax.random.normal(kw, (input_size, d_model, 3), dtype=jnp.float32)

    w_kernel = prepare_weight(weight)                 # packed once, off hot path
    out = jax.block_until_ready(token_de_embedding(x, w_kernel))

    # Reference on the same bf16-quantized operands (kernel uses the bf16 MXU
    # path with f32 accumulation and a bf16 store), computed in plain f32 JAX.
    x_q = x.astype(jnp.float32)
    w_q = weight.astype(jnp.bfloat16).astype(jnp.float32)
    ref = _reference(x_q, w_q)

    assert out.shape == (B, L, input_size), out.shape
    assert out.dtype == jnp.bfloat16, out.dtype
    assert jnp.allclose(out.astype(jnp.float32), ref, atol=2e-2, rtol=2e-2), \
        float(jnp.max(jnp.abs(out.astype(jnp.float32) - ref)))

    # Also sanity-check the zero-copy NCW path used by NCW-tolerant consumers.
    out_ncw = jax.block_until_ready(
        token_de_embedding(x, w_kernel, return_ncw=True))
    assert out_ncw.shape == (B, input_size, L), out_ncw.shape

    print("KERNEL_OK")
</pallas_src>

<mosaic_0001>
module attributes {stable_mosaic.version = 11 : i64} {
  func.func @token_conv_kernel(%arg0: i32, %arg1: memref<1x128x32xbf16, #tpu.memory_space<vmem>>, %arg2: memref<48x32xbf16, #tpu.memory_space<vmem>>, %arg3: memref<1x16x128xbf16, #tpu.memory_space<vmem>>) attributes {dimension_semantics = [#tpu.dimension_semantics<parallel>], iteration_bounds = array<i64: 2>, scalar_prefetch = 0 : i64, scratch_operands = 0 : i64, tpu.core_type = #tpu.core_type<tc>, window_params = [{transform_indices = @transform_0, window_bounds = array<i64: 1, 128, 32>}, {pipeline_mode = #tpu.pipeline_mode<synchronous>, transform_indices = @transform_1, window_bounds = array<i64: 48, 32>}, {transform_indices = @transform_2, window_bounds = array<i64: 1, 16, 128>}]} {
    %c0 = arith.constant 0 : index
    %c0_0 = arith.constant 0 : index
    %c0_1 = arith.constant 0 : index
    %0 = vector.load %arg1[%c0, %c0_0, %c0_1] : memref<1x128x32xbf16, #tpu.memory_space<vmem>>, vector<1x128x32xbf16>
    %1 = vector.shape_cast %0 : vector<1x128x32xbf16> to vector<128x32xbf16>
    %c0_2 = arith.constant 0 : index
    %c0_3 = arith.constant 0 : index
    %2 = vector.load %arg2[%c0_2, %c0_3] : memref<48x32xbf16, #tpu.memory_space<vmem>>, vector<48x32xbf16>
    %cst = arith.constant dense<0.000000e+00> : vector<48x128xf32>
    %3 = tpu.matmul %2, %1, %cst {dimension_numbers = #tpu.dot_dimension_numbers<[1], [1], [0], [0], [0, 0, 1, 0], [], []>} : vector<48x32xbf16>, vector<128x32xbf16>, vector<48x128xf32> -> vector<48x128xf32>
    %4 = vector.extract_strided_slice %3 {offsets = [0, 0], sizes = [16, 128], strides = [1, 1]} : vector<48x128xf32> to vector<16x128xf32>
    %c1_i32 = arith.constant 1 : i32
    %5 = tpu.dynamic_rotate %4 by %c1_i32 dim 1 : vector<16x128xf32>, i32 -> vector<16x128xf32>
    %6 = vector.extract_strided_slice %3 {offsets = [16, 0], sizes = [16, 128], strides = [1, 1]} : vector<48x128xf32> to vector<16x128xf32>
    %7 = arith.addf %5, %6 : vector<16x128xf32>
    %8 = vector.extract_strided_slice %3 {offsets = [32, 0], sizes = [16, 128], strides = [1, 1]} : vector<48x128xf32> to vector<16x128xf32>
    %c127_i32 = arith.constant 127 : i32
    %9 = tpu.dynamic_rotate %8 by %c127_i32 dim 1 : vector<16x128xf32>, i32 -> vector<16x128xf32>
    %10 = arith.addf %7, %9 : vector<16x128xf32>
    %11 = arith.truncf %10 : vector<16x128xf32> to vector<16x128xbf16>
    %c0_4 = arith.constant 0 : index
    %c0_5 = arith.constant 0 : index
    %c0_6 = arith.constant 0 : index
    %12 = vector.load %arg3[%c0_4, %c0_5, %c0_6] : memref<1x16x128xbf16, #tpu.memory_space<vmem>>, vector<1x16x128xbf16>
    %13 = vector.shape_cast %12 : vector<1x16x128xbf16> to vector<16x128xbf16>
    %14 = vector.shape_cast %11 : vector<16x128xbf16> to vector<1x16x128xbf16>
    tpu.vector_store %arg3[%c0_4, %c0_5, %c0_6], %14 {strides = array<i32>} : memref<1x16x128xbf16, #tpu.memory_space<vmem>>, vector<1x16x128xbf16>,
    return
  }
  func.func @transform_0(%arg0: i32) -> (i32, i32, i32) {
    %c0_i32 = arith.constant 0 : i32
    %c0_i32_0 = arith.constant 0 : i32
    %c0_i32_1 = arith.constant 0 : i32
    return %arg0, %c0_i32, %c0_i32_0 : i32, i32, i32
  }
  func.func @transform_1(%arg0: i32) -> (i32, i32) {
    %c0_i32 = arith.constant 0 : i32
    %c0_i32_0 = arith.constant 0 : i32
    %c0_i32_1 = arith.constant 0 : i32
    return %c0_i32, %c0_i32_0 : i32, i32
  }
  func.func @transform_2(%arg0: i32) -> (i32, i32, i32) {
    %c0_i32 = arith.constant 0 : i32
    %c0_i32_0 = arith.constant 0 : i32
    %c0_i32_1 = arith.constant 0 : i32
    return %arg0, %c0_i32, %c0_i32_0 : i32, i32, i32
  }
}

</mosaic_0001>

<bundles_post_ra>
// kernel: token_de_embedding.1
= control target key start
LH: loop header
LB: loop body
LE: loop exit
PB: predicated region body
PF: predicated region fallthrough
CT: control target
= control target key end

     0   :  { %7 = vsyncpa [#allocation3], 0  ;;  %s779_s0 = inlined_call_operand.vmem [shape: bf16[2,128,32], index: 0, kind: input, shape index: {}]   ;;  %s780_s1 = inlined_call_operand.vmem [shape: bf16[48,32], index: 1, kind: input, shape index: {}]   ;;  %s781_s2 = inlined_call_operand.hbm [shape: bf16[2,16,128], index: 2, kind: output, shape index: {}]  }
   0x1   :  { %9 = vsyncpa [#allocation3 + $0x1], 0  ;;  %s643_s9 = smov 0   ;;  %s645_s10 = smov 0  }
   0x2   :  { %s647_s11 = smov 0   ;;  %s649_s12 = smov 0  }
   0x3 LB: > { %s664_s13 = sadd.s32 4294967295, %s619_s12   ;;  %s409_s14 = sadd.s32 4294967294, %s619_s12   ;;  %s619_s12 = sphi %s649_s12, %s787_s12   ;;  %s615_s11 = sphi %s647_s11, %s786_s11   ;;  %s611_s10 = sphi %s645_s10, %s785_s10   ;;  %s607_s9 = sphi %s643_s9, %s784_s9  }
   0x4   : > { %s668_s15 = sadd.s32 1, %s619_s12   ;;  %s69_s16 = sadd.s32 1, %s615_s11 }
   0x5   : > { %s66_s17 = ssub.s32 %s619_s12, %s668_s15  ;;  %p79_p0 = scmp.ne.s32.totalorder %s615_s11, %s611_s10 }
   0x6   : > { %p67_p1 = scmp.eq.s32.totalorder %s66_s17, 0  ;;  %p80_p2 = scmp.eq.s32.totalorder %s664_s13, 1 }
   0x7   : > { %p85_p3 = scmp.ne.s32.totalorder %s611_s10, %s607_s9  ;;  %p86_p4 = scmp.eq.s32.totalorder %s409_s14, 1 }
   0x8   : > { %s679_s18 = scalar_select %p67_p1, %s615_s11, %s69_s16  }
   0x9   : > { %p681_p5 = por %p80_p2, %p79_p0  ;;  %p685_p6 = por %p86_p4, %p85_p3 }
   0xa   : > { %p412_p7 = scmp.ge.s32.totalorder %s619_s12, 1  ;;  %p115_p8 = scmp.lt.s32.totalorder %s619_s12, 3 }
   0xc   : > { %p116_p9 = pnand %p412_p7, %p115_p8 }
   0xd   : > { %p137_p10 = scmp.lt.s32.totalorder (!%p116_p9), %s664_s13, 1  ;;  %v621_v0 = vmov (!%p116_p9), 0.0   ;;  %vm622_vm0 = vmmov (!%p116_p9), 0   ;;  %vm220_vm1 = vcmask (!%p116_p9), 261120   ;;  %v554_v17 = vld [vmem:[%s780_s1] sm:$0xff] (!%p116_p9)   ;;  %v555_v18 = vld [vmem:[%s780_s1 + $0x8] sm:$0xff] (!%p116_p9)  }
   0xe   : > { %119 = sbr.rel (%p116_p9) target bundleno = 448 (0x1c0), region = 28  ;;  %457 = vmatprep.subr.bf16.mxu0 (!%p116_p9), %v621_v0  ;;  %485 = vmatprep.subr.bf16.mxu1 (!%p116_p9), %v621_v0  ;;  %v556_v19 = vld [vmem:[%s780_s1 + $0x10] sm:$0xff] (!%p116_p9)   ;;  %s623_s4 = smov (!%p116_p9), 1  }
   0xf   : > { %473 = vmatprep.mubr.msk.bf16.mxu0 (!%p116_p9), %vm622_vm0, %v621_v0  ;;  %477 = vmatprep.mubr.msk.bf16.mxu1 (!%p116_p9), %vm622_vm0, %v621_v0  ;;  %s624_s5 = smov (!%p116_p9), 127   ;;  %s134_s6 = sand.u32 (!%p116_p9), 1, %s611_s10  }
  0x10   : > { %s413_s7 = sshll.u32 (!%p116_p9), %s134_s6, 3  ;;  %s440_s16 = sshll.u32 (!%p116_p9), %s664_s13, 7 }
  0x11   : > { %s136_s8 = scalar_lea.vmem (!%p116_p9), [#allocation2], %s413_s7  ;;  %s738_s23 = scalar_lea.sflag (!%p116_p9), [#allocation3], %s134_s6 }
  0x12   : > { %s347_s14 = sshll.u32 (!%p116_p9), %s136_s8, 4  ;;  %s731_s14 = int_to_ptr.vmem [resolvable:$true] %s347_s14 }
  0x13   : > { %s557_s24 = scalar_lea.vmem (!%p116_p9), %s731_s14, 128 }
  0x14   : > { %p558_p11 = scmp.ne.s32.totalorder (!%p116_p9), %s731_s14, %s557_s24 }
  0x15   : > { %s138_s21 = scalar_select %p137_p10, %s664_s13, 1 }
  0x16   : > { %p559_p12 = pnand %p558_p11, %p681_p5  ;;  %s625_s13 = smov [#allocation2]  }
  0x17   : > { %s437_s22 = sshll.u32 %s138_s21, 6 }
  0x18   : > { %s698_s25 = scalar_lea.vmem %s779_s0, %s437_s22  ;;  %s736_s22 = scalar_lea.hbm %s781_s2, %s440_s16 }
  0x19   : > { %v546_v1 = vld [vmem:[%s698_s25] sm:$0xff]   ;;  %v547_v3 = vld [vmem:[%s698_s25 + $0x8] sm:$0xff]   ;;  %v548_v5 = vld [vmem:[%s698_s25 + $0x10] sm:$0xff]   ;;  %p560_p13 = pneg %p559_p12 }
  0x1a   : > { %v231_v2 = vsel %vm220_vm1, %v546_v1, 0  ;;  %v234_v4 = vsel %vm220_vm1, %v547_v3, 0  ;;  %v237_v6 = vsel %vm220_vm1, %v548_v5, 0  ;;  %v549_v7 = vld [vmem:[%s698_s25 + $0x18] sm:$0xff]   ;;  %v550_v9 = vld [vmem:[%s698_s25 + $0x20] sm:$0xff]   ;;  %v551_v11 = vld [vmem:[%s698_s25 + $0x28] sm:$0xff]  }
  0x1b   : > { %458 = vmatpush3.bf16.xpose.msra.mxu0 %v231_v2  ;;  %493 = vmatpush3.bf16.xpose.msra.mxu1 %v231_v2  ;;  %v240_v8 = vsel %vm220_vm1, %v549_v7, 0  ;;  %v243_v10 = vsel %vm220_vm1, %v550_v9, 0  ;;  %v246_v12 = vsel %vm220_vm1, %v551_v11, 0  ;;  %v552_v13 = vld [vmem:[%s698_s25 + $0x30] sm:$0xff]   ;;  %v553_v15 = vld [vmem:[%s698_s25 + $0x38] sm:$0xff]   ;;  %s561_s25 = sshll.u32 %s625_s13, 4  ;;  %s562_s25 = int_to_ptr.vmem [resolvable:$false] %s561_s25 }
  0x1c   : > { %459 = vmatprep.subr.bf16.mxu0 %v621_v0  ;;  %486 = vmatprep.subr.bf16.mxu1 %v621_v0  ;;  %v249_v14 = vsel %vm220_vm1, %v552_v13, 0  ;;  %v252_v16 = vsel %vm220_vm1, %v553_v15, 0  ;;  %s563_s26 = scalar_lea.vmem %s562_s25, 256  ;;  %p564_p0 = scmp.lt.s32.totalorder %s731_s14, %s562_s25 }
  0x1d   : > { %p565_p1 = scmp.lt.s32.totalorder %s563_s26, %s557_s24 }
  0x1f   : > { %p566_p2 = por %p565_p1, %p564_p0 }
  0x21   : > { %p567_p3 = pnand %p566_p2, %p560_p13 }
  0x23   : > { %460 = vmatpush3.bf16.xpose.msra.mxu0 %v234_v4  ;;  %494 = vmatpush3.bf16.xpose.msra.mxu1 %v234_v4 }
  0x24   : > { %461 = vmatprep.subr.bf16.mxu0 %v621_v0  ;;  %487 = vmatprep.subr.bf16.mxu1 %v621_v0 }
  0x2b   : > { %462 = vmatpush3.bf16.xpose.msra.mxu0 %v237_v6  ;;  %495 = vmatpush3.bf16.xpose.msra.mxu1 %v237_v6 }
  0x2c   : > { %463 = vmatprep.subr.bf16.mxu0 %v621_v0  ;;  %488 = vmatprep.subr.bf16.mxu1 %v621_v0 }
  0x33   : > { %464 = vmatpush3.bf16.xpose.msra.mxu0 %v240_v8  ;;  %496 = vmatpush3.bf16.xpose.msra.mxu1 %v240_v8 }
  0x34   : > { %465 = vmatprep.subr.bf16.mxu0 %v621_v0  ;;  %489 = vmatprep.subr.bf16.mxu1 %v621_v0 }
  0x3b   : > { %466 = vmatpush3.bf16.xpose.msra.mxu0 %v243_v10  ;;  %497 = vmatpush3.bf16.xpose.msra.mxu1 %v243_v10 }
  0x3c   : > { %467 = vmatprep.subr.bf16.mxu0 %v621_v0  ;;  %490 = vmatprep.subr.bf16.mxu1 %v621_v0 }
  0x43   : > { %468 = vmatpush3.bf16.xpose.msra.mxu0 %v246_v12  ;;  %498 = vmatpush3.bf16.xpose.msra.mxu1 %v246_v12 }
  0x44   : > { %469 = vmatprep.subr.bf16.mxu0 %v621_v0  ;;  %491 = vmatprep.subr.bf16.mxu1 %v621_v0 }
  0x4b   : > { %470 = vmatpush3.bf16.xpose.msra.mxu0 %v249_v14  ;;  %499 = vmatpush3.bf16.xpose.msra.mxu1 %v249_v14 }
  0x4c   : > { %471 = vmatprep.subr.bf16.mxu0 %v621_v0  ;;  %492 = vmatprep.subr.bf16.mxu1 %v621_v0 }
  0x53   : > { %472 = vmatpush3.bf16.xpose.msra.mxu0 %v252_v16  ;;  %500 = vmatpush3.bf16.xpose.msra.mxu1 %v252_v16 }
  0x5a   : > { %474 = vmatmul.mubr.msk.bf16.vlgmr.msra.gmra.mrb[0].mxu0 %vm220_vm1, %v554_v17  ;;  %478 = vmatmul.mubr.msk.bf16.vlgmr.msra.gmra.mrb[0].mxu1 %vm220_vm1, %v555_v18 }
  0x5b   : > { %481 = vmatprep.mubr.msk.bf16.mxu1 %vm622_vm0, %v621_v0 }
  0x62   : > { %482 = vmatmul.mubr.msk.bf16.gmra.mrb[4].mxu1 %vm220_vm1, %v556_v19 }
 0x12d   : > { %v288_v20 = vpop.f32.mrb[0].mxu0  ;;  %v296_v21 = vpop.f32.mrb[0].mxu1 }
 0x12e   : > { %v479_v22 = vpop.f32.mrb[1].mxu1  ;;  %311 = vrot.lane.b32.xlu0 %v288_v20, %s623_s4  ;;  %v475_v23 = vpop.f32.mrb[1].mxu0 }
 0x12f   : > { %v299_v24 = vpop.f32.mrb[2].mxu1  ;;  %v291_v25 = vpop.f32.mrb[2].mxu0 }
 0x130   : > { %v480_v26 = vpop.f32.mrb[3].mxu1  ;;  %v476_v27 = vpop.f32.mrb[3].mxu0 }
 0x132   : > { %313 = vrot.lane.b32.xlu0 %v291_v25, %s623_s4 }
 0x135   : > { %v304_v28 = vpop.f32.mrb[4].mxu1 }
 0x136   : > { %317 = vrot.lane.b32.xlu1 %v304_v28, %s624_s5  ;;  %v483_v29 = vpop.f32.mrb[5].mxu1 }
 0x137   : > { %v307_v30 = vpop.f32.mrb[6].mxu1 }
 0x138   : > { %v484_v31 = vpop.f32.mrb[7].mxu1 }
 0x13a   : > { %319 = vrot.lane.b32.xlu1 %v307_v30, %s624_s5 }
 0x1a0   : > { %v312_v32 = vpop.permute.xlu0 %311 }
 0x1a1   : > { %v315_v35 = vadd.f32 %v312_v32, %v296_v21 }
 0x1a4   : > { %v314_v33 = vpop.permute.xlu0 %313 }
 0x1a5   : > { %v316_v36 = vadd.f32 %v314_v33, %v299_v24 }
 0x1a8   : > { %v318_v34 = vpop.permute.xlu1 %317 }
 0x1a9   : > { %v321_v38 = vadd.f32 %v318_v34, %v315_v35 }
 0x1ac   : > { %v320_v37 = vpop.permute.xlu1 %319 }
 0x1ad   : > { %v322_v39 = vadd.f32 %v320_v37, %v316_v36 }
 0x1af   : > { %v444_v40 = vpack.c.bf16 %v322_v39, %v321_v38 }
 0x1b1   : > { %445 = vst [vmem:[%s136_s8] sm:$0xff] %v444_v40  }
 0x1b2   : > { %570 = shalt.err (!%p567_p3)
}
 0x1b3   : > { %s571_s27 = scalar_lea.hbm %s736_s22, 128  ;;  %s575_s30 = scalar_lea.hbm %s781_s2, 256 }
 0x1b4   : > { %p572_p4 = scmp.ne.s32.totalorder %s736_s22, %s571_s27  ;;  %p576_p9 = scmp.lt.u32.totalorder %s736_s22, %s781_s2 }
 0x1b5   : > { %p577_p10 = scmp.lt.u32.totalorder %s575_s30, %s571_s27  ;;  %p579_p12 = scmp.lt.u32.totalorder %s571_s27, %s736_s22 }
 0x1b6   : > { %p573_p7 = pnand %p572_p4, %p681_p5 }
 0x1b7   : > { %p578_p11 = por %p577_p10, %p576_p9 }
 0x1b8   : > { %p574_p8 = pneg %p573_p7 }
 0x1b9   : > { %p580_p13 = por %p579_p12, %p578_p11 }
 0x1bb   : > { %p581_p0 = pnand %p580_p13, %p574_p8 }
 0x1bd   : > { %584 = shalt.err (!%p581_p0)
}
 0x1be   : > { %s626_s5 = smov 64   ;;  %s627_s6 = smov 4  }
 0x1bf   : > { %501 = dma.vmem_to_hbm [thread:$0]  (%p681_p5), %s731_s14, 128, %s736_s22, %s738_s23, %s626_s5, %s626_s5, %s627_s6  }
 0x1c0 PF: > { %p507_p1 = scmp.ge.s32.totalorder %s619_s12, 2  ;;  %s362_s7 = sand.u32 1, %s607_s9  }
 0x1c1   : > { %s363_s8 = scalar_lea.sflag [#allocation3], %s362_s7 }
 0x1c2   : > { %p504_p2 = pnand %p507_p1, %p685_p6 }
 0x1c4   : > { %602 = dma.done.wait (!%p504_p2), %s363_s8, 128  }
 0x1c5   : > { %604 = vsyncadd (!%p504_p2), %s363_s8, 4294967168  ;;  %p12_p3 = scmp.ge.s32.totalorder %s668_s15, 4   ;;  %s784_s9 = smov %s611_s10 }
 0x1c6   : > { %s785_s10 = smov %s615_s11  ;;  %s786_s11 = smov %s679_s18 }
 0x1c7   : > { %s787_s12 = smov %s668_s15  ;;  %14 = sbr.rel (!%p12_p3) target bundleno = 3 (0x3), region = 63 }
 0x1ce   :  { %368 = vsyncpa [#allocation3], 1 }
 0x1cf   :  { %370 = vsyncpa [#allocation3 + $0x1], 1 }

</bundles_post_ra>
